<compile_context>
chip_gen: v7x
topology: tpu7x:2x2x1
jax: 0.10.0
libtpu: 0.0.40
codegen_flags: <defaults>
</compile_context>

<pallas_src>
import math

import numpy as np
import jax
import jax.numpy as jnp
from jax import lax
from jax.experimental import pallas as pl
from jax.experimental.pallas import tpu as pltpu


def _round_up(v, m):
    return (v + m - 1) // m * m


def _make_fcu_down_kernel(c_real, mean_col, approximate_gelu, eps=1e-6):
    inv_c = 1.0 / float(c_real)
    inv_sqrt2 = 1.0 / math.sqrt(2.0)
    tanh_c = math.sqrt(2.0 / math.pi)

    def kernel(x_ref, w_ref, b_ref, g_ref, beta_ref, o_ref):
        # x_ref:    (TL, Cin)    pooled-patch tokens (compute dtype, e.g. bf16)
        # w_ref:    (Cin, Cpad)  1x1x1 conv weight, channels-last; column
        #                        `mean_col` (if any) = rowsum(W)/C, other padded
        #                        columns are zero.
        # b_ref:    (1, Cpad)    conv bias (f32); column `mean_col` = mean(bias)
        # g_ref:    (1, Cpad)    LN gamma (f32, zero-padded)
        # beta_ref: (1, Cpad)    LN beta  (f32, zero-padded)
        # o_ref:    (TL, Cpad)
        z = jnp.dot(x_ref[...], w_ref[...], preferred_element_type=jnp.float32)
        z = z + b_ref[...]

        # LayerNorm statistics over the real channels (eps=1e-6), one-pass form.
        sumsq = jnp.sum(z * z, axis=-1, keepdims=True)            # single XLU reduce
        if mean_col is not None:
            mean = z[:, mean_col:mean_col + 1]                     # mean via MXU column
            sumsq = sumsq - mean * mean                            # drop mean-col term
        else:
            mean = jnp.sum(z, axis=-1, keepdims=True) * inv_c
        var = sumsq * inv_c - mean * mean                          # E[z^2] - mean^2
        zn = (z - mean) * lax.rsqrt(var + eps)
        zn = zn * g_ref[...] + beta_ref[...]                       # padded lanes -> 0

        if approximate_gelu:
            # tanh-approx GELU: transcendental goes to the (otherwise idle) EUP.
            y = 0.5 * zn * (1.0 + jnp.tanh(tanh_c * (zn + 0.044715 * zn * zn * zn)))
        else:
            # exact (erf) GELU, matching torch.nn.GELU() default
            y = 0.5 * zn * (1.0 + lax.erf(zn * inv_sqrt2))
        o_ref[...] = y.astype(o_ref.dtype)

    return kernel


def fcu_down(x, x_t, conv_w, conv_b, ln_g, ln_b, dw_stride, *,
             token_tile=None, compute_dtype=jnp.bfloat16, out_dtype=None,
             approximate_gelu=False):
    """Pallas implementation of FCUDown.forward(x, x_t).

    x:      (N, C_in, D, H, W)      PyTorch NCDHW Conv3d layout
    x_t:    (N, T, C_out)           only the class token x_t[:, 0] is used
    conv_w: (C_out, C_in)           1x1x1 Conv3d weight (spatial dims squeezed)
    conv_b, ln_g, ln_b: (C_out,)
    returns: (N, 1 + D*(H//s)*(W//s), C_out) in `out_dtype` (default x_t.dtype)

    token_tile:   tokens per grid step. None -> 1024, clamped to a ~40 MiB VMEM
                  budget (v7x-safe).  Use 256-512 on v5e (HBM-write bound there).
    compute_dtype: MXU matmul operand dtype (bf16 default; f32 exact).
    out_dtype:    kernel store / result dtype (bf16 halves the dominant HBM
                  write stream; default keeps x_t.dtype for torch parity).
    approximate_gelu: tanh-approx GELU on the EUP instead of exact erf on VALU.
    """
    N, Cin, D, H, W = x.shape
    s = int(dw_stride)
    assert H % s == 0 and W % s == 0, "spatial dims must be divisible by dw_stride"
    Hp, Wp = H // s, W // s
    L = Hp * Wp * D
    Cout = conv_w.shape[0]
    if out_dtype is None:
        out_dtype = x_t.dtype

    # ---- XLA prologue (linear glue; pool + transpose + cast fuse into one pass) ----
    # AvgPool3d(1,s,s) commutes with the pointwise conv -> pool FIRST on raw x,
    # shrinking the transpose and the kernel input stream by s*s.
    xp = x.reshape(N, Cin, D, Hp, s, Wp, s).mean(axis=(4, 6))          # (N,Cin,D,Hp,Wp)
    # token order t = (h'*Wp + w')*D + d matches PyTorch flatten(3)/transpose chain.
    xp = jnp.transpose(xp, (0, 3, 4, 2, 1)).reshape(N * L, Cin).astype(compute_dtype)

    # Lane-dense output channels: pad C_out up to a multiple of 128.
    Cpad = _round_up(Cout, 128)
    inv_c = 1.0 / float(Cout)

    w = conv_w.T.astype(jnp.float32)                                   # (Cin, Cout)
    b = conv_b.astype(jnp.float32).reshape(1, Cout)
    g = ln_g.astype(jnp.float32).reshape(1, Cout)
    be = ln_b.astype(jnp.float32).reshape(1, Cout)

    if Cpad > Cout:
        # Spare padded column `Cout` carries the channel mean: fold rowsum(W)/C
        # (and mean(bias)) into the matmul, removing one XLU reduction per step.
        mean_col = Cout
        pad = Cpad - Cout
        w = jnp.concatenate(
            [w, jnp.sum(w, axis=1, keepdims=True) * inv_c,
             jnp.zeros((Cin, pad - 1), jnp.float32)], axis=1)
        b = jnp.concatenate(
            [b, jnp.mean(b, axis=1, keepdims=True),
             jnp.zeros((1, pad - 1), jnp.float32)], axis=1)
        g = jnp.pad(g, ((0, 0), (0, pad)))
        be = jnp.pad(be, ((0, 0), (0, pad)))
    else:
        mean_col = None
    w = w.astype(compute_dtype)

    # ---- Token tiling: batch folded into one long "parallel" token axis ----
    NL = N * L
    comp_isz = np.dtype(compute_dtype).itemsize
    out_isz = np.dtype(out_dtype).itemsize

    def vmem_estimate(t):
        # double-buffered streams + resident params + ~4 live (tl,Cpad) f32 temps
        return (2 * t * Cin * comp_isz + 2 * t * Cpad * out_isz
                + 2 * (Cin * Cpad * comp_isz + 3 * Cpad * 4)
                + 4 * t * Cpad * 4)

    VMEM_BUDGET = 40 << 20              # headroom under v7x's 64 MiB physical VMEM
    tl = 1024 if token_tile is None else int(token_tile)
    tl = _round_up(max(16, min(tl, _round_up(NL, 16))), 16)
    while tl > 16 and vmem_estimate(tl) > VMEM_BUDGET:
        tl = _round_up(tl // 2, 16)
    vmem_limit = int(min(48 << 20, max(32 << 20, vmem_estimate(tl) + (4 << 20))))

    NLp = _round_up(NL, tl)
    if NLp > NL:
        xp = jnp.pad(xp, ((0, NLp - NL), (0, 0)))

    kernel = _make_fcu_down_kernel(Cout, mean_col, approximate_gelu)
    out = pl.pallas_call(
        kernel,
        out_shape=jax.ShapeDtypeStruct((NLp, Cpad), out_dtype),
        grid_spec=pltpu.PrefetchScalarGridSpec(
            num_scalar_prefetch=0,
            grid=(NLp // tl,),
            in_specs=[
                pl.BlockSpec((tl, Cin), lambda t: (t, 0)),
                pl.BlockSpec((Cin, Cpad), lambda t: (0, 0)),   # constant index: fetched once
                pl.BlockSpec((1, Cpad), lambda t: (0, 0)),
                pl.BlockSpec((1, Cpad), lambda t: (0, 0)),
                pl.BlockSpec((1, Cpad), lambda t: (0, 0)),
            ],
            out_specs=pl.BlockSpec((tl, Cpad), lambda t: (t, 0)),
        ),
        compiler_params=pltpu.CompilerParams(
            # On v7x the single "parallel" token axis is what gets sharded across
            # the 2 TensorCores; verify both TCs are busy in xprof if tuning there.
            dimension_semantics=("parallel",),
            vmem_limit_bytes=vmem_limit),
    )(xp, w, b, g, be)

    # Strip padding (channel slice is a no-op when Cout % 128 == 0), restore
    # (N, L, Cout) and prepend the class token.  XLA fuses the slice into the
    # concat copy; a dynamic_update_slice into a preallocated buffer costs the same.
    out = out[:NL, :Cout].reshape(N, L, Cout)
    cls = x_t[:, 0:1, :].astype(out_dtype)
    return jnp.concatenate([cls, out], axis=1)


def _reference(x, x_t, conv_w, conv_b, ln_g, ln_b, s):
    """Pure-JAX reference reproducing the PyTorch forward exactly."""
    N, Cin, D, H, W = x.shape
    Cout = conv_w.shape[0]
    # 1x1x1 conv
    y = jnp.einsum('ncdhw,oc->nodhw', x, conv_w) + conv_b[None, :, None, None, None]
    # AvgPool3d (1, s, s)
    Hp, Wp = H // s, W // s
    y = y.reshape(N, Cout, D, Hp, s, Wp, s).mean(axis=(4, 6))
    # flatten(3) -> transpose(2,3) -> view(N,C,-1) -> transpose(1,2)
    y = y.reshape(N, Cout, D, Hp * Wp)
    y = jnp.transpose(y, (0, 1, 3, 2))
    y = y.reshape(N, Cout, -1)
    y = jnp.transpose(y, (0, 2, 1))
    # LayerNorm(eps=1e-6) over channels
    mean = y.mean(-1, keepdims=True)
    var = ((y - mean) ** 2).mean(-1, keepdims=True)
    y = (y - mean) / jnp.sqrt(var + 1e-6) * ln_g + ln_b
    # exact GELU
    y = jax.nn.gelu(y, approximate=False)
    return jnp.concatenate([x_t[:, 0:1, :], y], axis=1)


if __name__ == "__main__":
    # Small, deterministic configuration.
    N, Cin, Cout, s = 2, 4, 32, 2
    D, H, W = 4, 8, 8
    L = D * (H // s) * (W // s)  # 64 tokens

    key = jax.random.PRNGKey(0)
    k1, k2, k3, k4, k5, k6 = jax.random.split(key, 6)
    x = jax.random.normal(k1, (N, Cin, D, H, W), dtype=jnp.float32)
    x_t = jax.random.normal(k2, (N, 1 + L, Cout), dtype=jnp.float32)
    conv_w = jax.random.normal(k3, (Cout, Cin), dtype=jnp.float32) * 0.1
    conv_b = jax.random.normal(k4, (Cout,), dtype=jnp.float32) * 0.1
    ln_g = 1.0 + 0.05 * jax.random.normal(k5, (Cout,), dtype=jnp.float32)
    ln_b = 0.05 * jax.random.normal(k6, (Cout,), dtype=jnp.float32)

    ref = _reference(x, x_t, conv_w, conv_b, ln_g, ln_b, s)

    # Exact f32 path: validates kernel math (MXU-folded mean + one-pass variance).
    out_f32 = jax.block_until_ready(
        fcu_down(x, x_t, conv_w, conv_b, ln_g, ln_b, s,
                 compute_dtype=jnp.float32, out_dtype=jnp.float32))
    assert out_f32.shape == (N, 1 + L, Cout), out_f32.shape
    assert jnp.allclose(out_f32, ref, rtol=1e-4, atol=1e-5), \
        float(jnp.max(jnp.abs(out_f32 - ref)))

    # Default perf path: bf16 MXU operands, f32 accumulation/epilogue, f32 store.
    out_def = jax.block_until_ready(fcu_down(x, x_t, conv_w, conv_b, ln_g, ln_b, s))
    assert jnp.allclose(out_def, ref, rtol=5e-2, atol=5e-2), \
        float(jnp.max(jnp.abs(out_def - ref)))

    # bf16-output path (halves the dominant HBM write stream) + tanh-approx GELU (EUP).
    out_bf16 = jax.block_until_ready(
        fcu_down(x, x_t, conv_w, conv_b, ln_g, ln_b, s,
                 out_dtype=jnp.bfloat16, approximate_gelu=True))
    assert out_bf16.dtype == jnp.bfloat16
    assert jnp.allclose(out_bf16.astype(jnp.float32), ref, rtol=5e-2, atol=5e-2), \
        float(jnp.max(jnp.abs(out_bf16.astype(jnp.float32) - ref)))

    # Cout % 128 == 0 config (no spare mean column -> XLU-mean fallback), exact f32.
    Cout2, s2 = 128, 2
    L2 = 2 * 2 * 2
    x2 = jax.random.normal(k1, (1, Cin, 2, 4, 4), dtype=jnp.float32)
    x_t2 = jax.random.normal(k2, (1, 1 + L2, Cout2), dtype=jnp.float32)
    w2 = jax.random.normal(k3, (Cout2, Cin), dtype=jnp.float32) * 0.1
    b2 = jax.random.normal(k4, (Cout2,), dtype=jnp.float32) * 0.1
    g2 = 1.0 + 0.05 * jax.random.normal(k5, (Cout2,), dtype=jnp.float32)
    be2 = 0.05 * jax.random.normal(k6, (Cout2,), dtype=jnp.float32)
    ref2 = _reference(x2, x_t2, w2, b2, g2, be2, s2)
    out2 = jax.block_until_ready(
        fcu_down(x2, x_t2, w2, b2, g2, be2, s2,
                 compute_dtype=jnp.float32, out_dtype=jnp.float32))
    assert jnp.allclose(out2, ref2, rtol=1e-4, atol=1e-5), \
        float(jnp.max(jnp.abs(out2 - ref2)))

    print("KERNEL_OK")
</pallas_src>

<mosaic_0001>
module attributes {stable_mosaic.version = 11 : i64} {
  func.func @kernel(%arg0: i32, %arg1: memref<128x4xf32, #tpu.memory_space<vmem>>, %arg2: memref<4x128xf32, #tpu.memory_space<vmem>>, %arg3: memref<1x128xf32, #tpu.memory_space<vmem>>, %arg4: memref<1x128xf32, #tpu.memory_space<vmem>>, %arg5: memref<1x128xf32, #tpu.memory_space<vmem>>, %arg6: memref<128x128xf32, #tpu.memory_space<vmem>>) attributes {dimension_semantics = [#tpu.dimension_semantics<parallel>], iteration_bounds = array<i64: 1>, scalar_prefetch = 0 : i64, scratch_operands = 0 : i64, tpu.core_type = #tpu.core_type<tc>, window_params = [{transform_indices = @transform_0, window_bounds = array<i64: 128, 4>}, {pipeline_mode = #tpu.pipeline_mode<synchronous>, transform_indices = @transform_1, window_bounds = array<i64: 4, 128>}, {pipeline_mode = #tpu.pipeline_mode<synchronous>, transform_indices = @transform_2, window_bounds = array<i64: 1, 128>}, {pipeline_mode = #tpu.pipeline_mode<synchronous>, transform_indices = @transform_3, window_bounds = array<i64: 1, 128>}, {pipeline_mode = #tpu.pipeline_mode<synchronous>, transform_indices = @transform_4, window_bounds = array<i64: 1, 128>}, {transform_indices = @transform_5, window_bounds = array<i64: 128, 128>}]} {
    %c0 = arith.constant 0 : index
    %c0_0 = arith.constant 0 : index
    %0 = vector.load %arg1[%c0, %c0_0] : memref<128x4xf32, #tpu.memory_space<vmem>>, vector<128x4xf32>
    %c0_1 = arith.constant 0 : index
    %c0_2 = arith.constant 0 : index
    %1 = vector.load %arg2[%c0_1, %c0_2] : memref<4x128xf32, #tpu.memory_space<vmem>>, vector<4x128xf32>
    %cst = arith.constant dense<0.000000e+00> : vector<128x128xf32>
    %2 = tpu.matmul %0, %1, %cst {dimension_numbers = #tpu.dot_dimension_numbers<[1], [0], [0], [1], [0, 0, 1, 1], [], []>} : vector<128x4xf32>, vector<4x128xf32>, vector<128x128xf32> -> vector<128x128xf32>
    %c0_3 = arith.constant 0 : index
    %c0_4 = arith.constant 0 : index
    %3 = vector.load %arg3[%c0_3, %c0_4] : memref<1x128xf32, #tpu.memory_space<vmem>>, vector<1x128xf32>
    %4 = vector.broadcast %3 : vector<1x128xf32> to vector<128x128xf32>
    %5 = arith.addf %2, %4 : vector<128x128xf32>
    %6 = arith.mulf %5, %5 : vector<128x128xf32>
    %cst_5 = arith.constant dense<0.000000e+00> : vector<128xf32>
    %7 = vector.multi_reduction <add>, %6, %cst_5 [1] : vector<128x128xf32> to vector<128xf32>
    %8 = vector.shape_cast %7 : vector<128xf32> to vector<128x1xf32>
    %9 = vector.extract_strided_slice %5 {offsets = [0, 32], sizes = [128, 1], strides = [1, 1]} : vector<128x128xf32> to vector<128x1xf32>
    %10 = arith.mulf %9, %9 : vector<128x1xf32>
    %11 = arith.subf %8, %10 : vector<128x1xf32>
    %cst_6 = arith.constant 3.125000e-02 : f32
    %12 = vector.broadcast %cst_6 : f32 to vector<128x1xf32>
    %13 = arith.mulf %11, %12 : vector<128x1xf32>
    %14 = arith.mulf %9, %9 : vector<128x1xf32>
    %15 = arith.subf %13, %14 : vector<128x1xf32>
    %16 = vector.broadcast %9 : vector<128x1xf32> to vector<128x128xf32>
    %17 = arith.subf %5, %16 : vector<128x128xf32>
    %cst_7 = arith.constant 9.99999997E-7 : f32
    %18 = vector.broadcast %cst_7 : f32 to vector<128x1xf32>
    %19 = arith.addf %15, %18 : vector<128x1xf32>
    %20 = math.rsqrt %19 : vector<128x1xf32>
    %21 = vector.broadcast %20 : vector<128x1xf32> to vector<128x128xf32>
    %22 = arith.mulf %17, %21 : vector<128x128xf32>
    %c0_8 = arith.constant 0 : index
    %c0_9 = arith.constant 0 : index
    %23 = vector.load %arg4[%c0_8, %c0_9] : memref<1x128xf32, #tpu.memory_space<vmem>>, vector<1x128xf32>
    %24 = vector.broadcast %23 : vector<1x128xf32> to vector<128x128xf32>
    %25 = arith.mulf %22, %24 : vector<128x128xf32>
    %c0_10 = arith.constant 0 : index
    %c0_11 = arith.constant 0 : index
    %26 = vector.load %arg5[%c0_10, %c0_11] : memref<1x128xf32, #tpu.memory_space<vmem>>, vector<1x128xf32>
    %27 = vector.broadcast %26 : vector<1x128xf32> to vector<128x128xf32>
    %28 = arith.addf %25, %27 : vector<128x128xf32>
    %cst_12 = arith.constant 5.000000e-01 : f32
    %29 = vector.broadcast %cst_12 : f32 to vector<128x128xf32>
    %30 = arith.mulf %29, %28 : vector<128x128xf32>
    %cst_13 = arith.constant 0.707106769 : f32
    %31 = vector.broadcast %cst_13 : f32 to vector<128x128xf32>
    %32 = arith.mulf %28, %31 : vector<128x128xf32>
    %33 = math.erf %32 : vector<128x128xf32>
    %cst_14 = arith.constant 1.000000e+00 : f32
    %34 = vector.broadcast %cst_14 : f32 to vector<128x128xf32>
    %35 = arith.addf %34, %33 : vector<128x128xf32>
    %36 = arith.mulf %30, %35 : vector<128x128xf32>
    %c0_15 = arith.constant 0 : index
    %c0_16 = arith.constant 0 : index
    %37 = vector.load %arg6[%c0_15, %c0_16] : memref<128x128xf32, #tpu.memory_space<vmem>>, vector<128x128xf32>
    tpu.vector_store %arg6[%c0_15, %c0_16], %36 {strides = array<i32>} : memref<128x128xf32, #tpu.memory_space<vmem>>, vector<128x128xf32>,
    return
  }
  func.func @transform_0(%arg0: i32) -> (i32, i32) {
    %c0_i32 = arith.constant 0 : i32
    %c0_i32_0 = arith.constant 0 : i32
    return %arg0, %c0_i32 : i32, i32
  }
  func.func @transform_1(%arg0: i32) -> (i32, i32) {
    %c0_i32 = arith.constant 0 : i32
    %c0_i32_0 = arith.constant 0 : i32
    %c0_i32_1 = arith.constant 0 : i32
    return %c0_i32, %c0_i32_0 : i32, i32
  }
  func.func @transform_2(%arg0: i32) -> (i32, i32) {
    %c0_i32 = arith.constant 0 : i32
    %c0_i32_0 = arith.constant 0 : i32
    %c0_i32_1 = arith.constant 0 : i32
    return %c0_i32, %c0_i32_0 : i32, i32
  }
  func.func @transform_3(%arg0: i32) -> (i32, i32) {
    %c0_i32 = arith.constant 0 : i32
    %c0_i32_0 = arith.constant 0 : i32
    %c0_i32_1 = arith.constant 0 : i32
    return %c0_i32, %c0_i32_0 : i32, i32
  }
  func.func @transform_4(%arg0: i32) -> (i32, i32) {
    %c0_i32 = arith.constant 0 : i32
    %c0_i32_0 = arith.constant 0 : i32
    %c0_i32_1 = arith.constant 0 : i32
    return %c0_i32, %c0_i32_0 : i32, i32
  }
  func.func @transform_5(%arg0: i32) -> (i32, i32) {
    %c0_i32 = arith.constant 0 : i32
    %c0_i32_0 = arith.constant 0 : i32
    return %arg0, %c0_i32 : i32, i32
  }
}

</mosaic_0001>

<bundles_post_ra>
// kernel: tpu_custom_call.1
= control target key start
LH: loop header
LB: loop body
LE: loop exit
PB: predicated region body
PF: predicated region fallthrough
CT: control target
= control target key end

     0   :  { %vm94_vm0 = vcmask 1043456   ;;  %vm45_vm1 = vcmask 31744   ;;  %s1262_s0 = inlined_call_operand.vmem [shape: f32[128,4], index: 0, kind: input, shape index: {}]   ;;  %s1263_s1 = inlined_call_operand.vmem [shape: f32[4,128], index: 1, kind: input, shape index: {}]   ;;  %s1264_s2 = inlined_call_operand.vmem [shape: f32[1,128], index: 2, kind: input, shape index: {}]   ;;  %s1265_s3 = inlined_call_operand.vmem [shape: f32[1,128], index: 3, kind: input, shape index: {}]   ;;  %s1266_s4 = inlined_call_operand.vmem [shape: f32[1,128], index: 4, kind: input, shape index: {}]   ;;  %s1267_s5 = inlined_call_operand.hbm [shape: f32[128,128], index: 5, kind: output, shape index: {}]  }
   0x1   :  { %v37_v0 = vld [vmem:[%s1263_s1] sm:$0xf]  ;;  %v22_v3 = vld [vmem:[%s1262_s0 + $0x8] sm:$0xff]  ;;  %v23_v5 = vld [vmem:[%s1262_s0 + $0x10] sm:$0xff] }
   0x2   :  { %v21_v1 = vld [vmem:[%s1262_s0] sm:$0xff]  ;;  %758 = vmatprep.subr.msk.mxu0 %vm94_vm0, %v37_v0  ;;  %784 = vmatprep.subr.msk.mxu1 %vm94_vm0, %v37_v0  ;;  %v30_v4 = vld [vmem:[%s1262_s0 + $0x48] sm:$0xff]  ;;  %v31_v6 = vld [vmem:[%s1262_s0 + $0x50] sm:$0xff] }
   0x3   :  { %v29_v2 = vld [vmem:[%s1262_s0 + $0x40] sm:$0xff]  ;;  %759 = vmatpush3.msk.msra.mxu0 %vm94_vm0, %v37_v0  ;;  %785 = vmatpush3.msk.msra.mxu1 %vm94_vm0, %v37_v0  ;;  %v24_v7 = vld [vmem:[%s1262_s0 + $0x18] sm:$0xff] }
   0x4   :  { %760 = vmatprep.mubr.msk.f32.mxu0 %vm45_vm1, %v21_v1  ;;  %772 = vmatprep.mubr.msk.f32.mxu1 %vm45_vm1, %v29_v2  ;;  %v32_v8 = vld [vmem:[%s1262_s0 + $0x58] sm:$0xff] }
   0x5   :  { %761 = vmatmul.mubr.msk.f32.vlgmr.msra.gmra.mrb[0].mxu0 %vm45_vm1, %v22_v3  ;;  %773 = vmatmul.mubr.msk.f32.vlgmr.msra.gmra.mrb[0].mxu1 %vm45_vm1, %v30_v4 }
   0x6   :  { %763 = vmatprep.mubr.msk.f32.mxu0 %vm45_vm1, %v23_v5  ;;  %775 = vmatprep.mubr.msk.f32.mxu1 %vm45_vm1, %v31_v6 }
   0x7   :  { %10 = vsyncpa [#allocation3], 0  ;;  %v25_v9 = vld [vmem:[%s1262_s0 + $0x20] sm:$0xff]  ;;  %v26_v11 = vld [vmem:[%s1262_s0 + $0x28] sm:$0xff]  ;;  %v880_v17 = vmov 32  }
   0x8   :  { %v33_v10 = vld [vmem:[%s1262_s0 + $0x60] sm:$0xff]  ;;  %v34_v12 = vld [vmem:[%s1262_s0 + $0x68] sm:$0xff]  ;;  %v27_v13 = vld [vmem:[%s1262_s0 + $0x30] sm:$0xff]  ;;  %791 = vset.pattern.permute.xlu1 %v880_v17  ;;  %790 = vset.pattern.permute.xlu0 %v880_v17 }
   0x9   :  { %764 = vmatmul.mubr.msk.f32.gmra.mrb[2].mxu0 %vm45_vm1, %v24_v7  ;;  %776 = vmatmul.mubr.msk.f32.gmra.mrb[2].mxu1 %vm45_vm1, %v32_v8  ;;  %v35_v14 = vld [vmem:[%s1262_s0 + $0x70] sm:$0xff]  ;;  %v28_v15 = vld [vmem:[%s1262_s0 + $0x38] sm:$0xff]  ;;  %v721_v18 = vld [vmem:[%s1264_s2] ss:$0 sm:$0xff] }
   0xa   :  { %766 = vmatprep.mubr.msk.f32.mxu0 %vm45_vm1, %v25_v9  ;;  %778 = vmatprep.mubr.msk.f32.mxu1 %vm45_vm1, %v33_v10  ;;  %v36_v16 = vld [vmem:[%s1262_s0 + $0x78] sm:$0xff] }
   0xd   :  { %767 = vmatmul.mubr.msk.f32.gmra.mrb[4].mxu0 %vm45_vm1, %v26_v11  ;;  %779 = vmatmul.mubr.msk.f32.gmra.mrb[4].mxu1 %vm45_vm1, %v34_v12 }
   0xe   :  { %769 = vmatprep.mubr.msk.f32.mxu0 %vm45_vm1, %v27_v13  ;;  %781 = vmatprep.mubr.msk.f32.mxu1 %vm45_vm1, %v35_v14 }
  0x11   :  { %770 = vmatmul.mubr.msk.f32.gmra.mrb[6].mxu0 %vm45_vm1, %v28_v15  ;;  %782 = vmatmul.mubr.msk.f32.gmra.mrb[6].mxu1 %vm45_vm1, %v36_v16 }
  0xd8   :  { %v762_v19 = vpop.f32.mrb[0].mxu0  ;;  %v774_v20 = vpop.f32.mrb[0].mxu1 }
  0xd9   :  { %v984_v21 = vadd.f32 %v762_v19, %v721_v18  ;;  %v986_v22 = vadd.f32 %v774_v20, %v721_v18  ;;  %v164_v23 = vpop.f32.mrb[1].mxu0  ;;  %v204_v24 = vpop.f32.mrb[1].mxu1 }
  0xda   :  { %v988_v25 = vadd.f32 %v721_v18, %v164_v23  ;;  %v1004_v34 = vadd.f32 %v721_v18, %v204_v24 }
  0xdb   :  { %v992_v26 = vmul.f32 %v986_v22, %v986_v22  ;;  %v996_v27 = vmul.f32 %v984_v21, %v984_v21 }
  0xdc   :  { %v765_v28 = vpop.f32.mrb[2].mxu0  ;;  %v777_v29 = vpop.f32.mrb[2].mxu1  ;;  %v1012_v36 = vmul.f32 %v988_v25, %v988_v25  ;;  %v1026_v44 = vmul.f32 %v1004_v34, %v1004_v34 }
  0xdd   :  { %v998_v30 = vadd.f32 %v765_v28, %v721_v18  ;;  %277 = vadd.xlane.f32.xlu1 %v992_v26  ;;  %261 = vadd.xlane.f32.xlu0 %v996_v27  ;;  %v174_v31 = vpop.f32.mrb[3].mxu0  ;;  %v1002_v32 = vadd.f32 %v777_v29, %v721_v18  ;;  %v214_v33 = vpop.f32.mrb[3].mxu1 }
  0xde   :  { %v1020_v42 = vadd.f32 %v721_v18, %v174_v31  ;;  %v1022_v43 = vadd.f32 %v721_v18, %v214_v33 }
  0xdf   :  { %v1008_v35 = vmul.f32 %v998_v30, %v998_v30  ;;  %v1018_v39 = vmul.f32 %v1002_v32, %v1002_v32 }
  0xe0   :  { %v768_v37 = vpop.f32.mrb[4].mxu0  ;;  %v780_v38 = vpop.f32.mrb[4].mxu1  ;;  %v1036_v51 = vmul.f32 %v1020_v42, %v1020_v42  ;;  %v1040_v52 = vmul.f32 %v1022_v43, %v1022_v43 }
  0xe1   :  { %265 = vadd.xlane.f32.xlu1 %v1008_v35  ;;  %259 = vadd.xlane.f32.xlu0 %v1012_v36  ;;  %v184_v40 = vpop.f32.mrb[5].mxu0  ;;  %v224_v41 = vpop.f32.mrb[5].mxu1  ;;  %v1030_v47 = vadd.f32 %v768_v37, %v721_v18  ;;  %v1042_v53 = vadd.f32 %v780_v38, %v721_v18 }
  0xe2   :  { %v1032_v48 = vadd.f32 %v721_v18, %v184_v40  ;;  %v1046_v54 = vadd.f32 %v721_v18, %v224_v41 }
  0xe3   :  { %v1050_v55 = vmul.f32 %v1030_v47, %v1030_v47  ;;  %v1058_v57 = vmul.f32 %v1042_v53, %v1042_v53 }
  0xe4   :  { %v771_v45 = vpop.f32.mrb[6].mxu0  ;;  %v783_v46 = vpop.f32.mrb[6].mxu1  ;;  %v1054_v56 = vmul.f32 %v1032_v48, %v1032_v48  ;;  %v1068_v60 = vmul.f32 %v1046_v54, %v1046_v54 }
  0xe5   :  { %281 = vadd.xlane.f32.xlu1 %v1018_v39  ;;  %275 = vadd.xlane.f32.xlu0 %v1026_v44  ;;  %v194_v49 = vpop.f32.mrb[7].mxu0  ;;  %v234_v50 = vpop.f32.mrb[7].mxu1  ;;  %v1062_v58 = vadd.f32 %v771_v45, %v721_v18  ;;  %v1070_v61 = vadd.f32 %v783_v46, %v721_v18 }
  0xe6   :  { %v1064_v59 = vadd.f32 %v721_v18, %v194_v49  ;;  %v1074_v62 = vadd.f32 %v721_v18, %v234_v50 }
  0xe7   :  { %v1078_v63 = vmul.f32 %v1062_v58, %v1062_v58  ;;  %v1088_v1 = vmul.f32 %v1070_v61, %v1070_v61 }
  0xe8   :  { %v1082_v0 = vmul.f32 %v1064_v59, %v1064_v59  ;;  %v1092_v2 = vmul.f32 %v1074_v62, %v1074_v62 }
  0xe9   :  { %263 = vadd.xlane.f32.xlu1 %v1036_v51  ;;  %279 = vadd.xlane.f32.xlu0 %v1040_v52 }
  0xed   :  { %269 = vadd.xlane.f32.xlu1 %v1050_v55  ;;  %267 = vadd.xlane.f32.xlu0 %v1054_v56 }
  0xf1   :  { %285 = vadd.xlane.f32.xlu1 %v1058_v57  ;;  %283 = vadd.xlane.f32.xlu0 %v1068_v60 }
  0xf5   :  { %273 = vadd.xlane.f32.xlu1 %v1078_v63  ;;  %271 = vadd.xlane.f32.xlu0 %v1082_v0 }
  0xf9   :  { %289 = vadd.xlane.f32.xlu1 %v1088_v1  ;;  %287 = vadd.xlane.f32.xlu0 %v1092_v2 }
 0x10a   :  { %346 = vperm.xlu1 %791, %v984_v21  }
 0x10e   :  { %351 = vperm.xlu1 %791, %v1020_v42  }
 0x10f   :  { %341 = vperm.xlu0 %790, %v988_v25  }
 0x112   :  { %356 = vperm.xlu1 %791, %v998_v30  }
 0x113   :  { %386 = vperm.xlu0 %790, %v986_v22  }
 0x116   :  { %361 = vperm.xlu1 %791, %v1032_v48  }
 0x117   :  { %396 = vperm.xlu0 %790, %v1002_v32  }
 0x11a   :  { %366 = vperm.xlu1 %791, %v1030_v47  }
 0x11b   :  { %406 = vperm.xlu0 %790, %v1042_v53  }
 0x11e   :  { %371 = vperm.xlu1 %791, %v1064_v59  }
 0x11f   :  { %416 = vperm.xlu0 %790, %v1070_v61  }
 0x122   :  { %376 = vperm.xlu1 %791, %v1062_v58  }
 0x126   :  { %381 = vperm.xlu1 %791, %v1004_v34  }
 0x12a   :  { %391 = vperm.xlu1 %791, %v1022_v43  }
 0x12e   :  { %401 = vperm.xlu1 %791, %v1046_v54  }
 0x132   :  { %411 = vperm.xlu1 %791, %v1074_v62  }
 0x16a   :  { %v278_v3 = vpop.xlane.xlu1 %277  ;;  %v262_v4 = vpop.xlane.xlu0 %261 }
 0x16b   :  { %v300_v5 = vsub.f32 %v278_v3, %v992_v26  ;;  %v292_v6 = vsub.f32 %v262_v4, %v996_v27 }
 0x16d   :  { %v316_v7 = vmul.f32 0.03125, %v300_v5  ;;  %v308_v8 = vmul.f32 0.03125, %v292_v6 }
 0x16e   :  { %v266_v9 = vpop.xlane.xlu1 %265  ;;  %v260_v10 = vpop.xlane.xlu0 %259 }
 0x16f   :  { %v332_v11 = vsub.f32 %v316_v7, %v992_v26  ;;  %v324_v12 = vsub.f32 %v308_v8, %v996_v27  ;;  %v294_v13 = vsub.f32 %v266_v9, %v1008_v35  ;;  %v291_v14 = vsub.f32 %v260_v10, %v1012_v36 }
 0x171   :  { %v436_v15 = vadd.f32 1e-06, %v324_v12  ;;  %v310_v16 = vmul.f32 0.03125, %v294_v13  ;;  %v307_v17 = vmul.f32 0.03125, %v291_v14  ;;  %v444_v20 = vadd.f32 1e-06, %v332_v11 }
 0x172   :  { %v282_v18 = vpop.xlane.xlu1 %281  ;;  %v276_v19 = vpop.xlane.xlu0 %275 }
 0x173   :  { %v326_v23 = vsub.f32 %v310_v16, %v1008_v35  ;;  %v323_v24 = vsub.f32 %v307_v17, %v1012_v36  ;;  %v302_v28 = vsub.f32 %v282_v18, %v1018_v39  ;;  %792 = vrsqrt.f32 %v436_v15 }
 0x174   :  { %v299_v26 = vsub.f32 %v276_v19, %v1026_v44  ;;  %794 = vrsqrt.f32 %v444_v20 }
 0x175   :  { %v435_v27 = vadd.f32 1e-06, %v323_v24  ;;  %v318_v29 = vmul.f32 0.03125, %v302_v28  ;;  %v438_v38 = vadd.f32 1e-06, %v326_v23 }
 0x176   :  { %v315_v31 = vmul.f32 0.03125, %v299_v26  ;;  %v264_v33 = vpop.xlane.xlu1 %263  ;;  %v280_v37 = vpop.xlane.xlu0 %279 }
 0x177   :  { %v293_v40 = vsub.f32 %v264_v33, %v1036_v51  ;;  %v301_v41 = vsub.f32 %v280_v37, %v1040_v52  ;;  %796 = vrsqrt.f32 %v435_v27  ;;  %v334_v35 = vsub.f32 %v318_v29, %v1018_v39 }
 0x178   :  { %v331_v36 = vsub.f32 %v315_v31, %v1026_v44  ;;  %798 = vrsqrt.f32 %v438_v38 }
 0x179   :  { %v309_v45 = vmul.f32 0.03125, %v293_v40  ;;  %v317_v46 = vmul.f32 0.03125, %v301_v41  ;;  %v446_v6 = vadd.f32 1e-06, %v334_v35 }
 0x17a   :  { %v443_v49 = vadd.f32 1e-06, %v331_v36  ;;  %v270_v50 = vpop.xlane.xlu1 %269  ;;  %v268_v3 = vpop.xlane.xlu0 %267 }
 0x17b   :  { %v325_v4 = vsub.f32 %v309_v45, %v1036_v51  ;;  %v296_v5 = vsub.f32 %v270_v50, %v1050_v55  ;;  %v333_v7 = vsub.f32 %v317_v46, %v1040_v52  ;;  %v295_v8 = vsub.f32 %v268_v3, %v1054_v56 }
 0x17c   :  { %800 = vrsqrt.f32 %v443_v49 }
 0x17d   :  { %v437_v9 = vadd.f32 1e-06, %v325_v4  ;;  %v312_v39 = vmul.f32 0.03125, %v296_v5  ;;  %v793_v10 = vpop.eup %792  ;;  %v311_v44 = vmul.f32 0.03125, %v295_v8  ;;  %v445_v15 = vadd.f32 1e-06, %v333_v7 }
 0x17e   :  { %v286_v11 = vpop.xlane.xlu1 %285  ;;  %v284_v12 = vpop.xlane.xlu0 %283  ;;  %474 = vperm.xlu0 %790, %v793_v10  }
 0x17f   :  { %802 = vrsqrt.f32 %v437_v9  ;;  %v328_v13 = vsub.f32 %v312_v39, %v1050_v55  ;;  %v304_v14 = vsub.f32 %v286_v11, %v1058_v57  ;;  %v303_v51 = vsub.f32 %v284_v12, %v1068_v60  ;;  %v795_v16 = vpop.eup %794 }
 0x180   :  { %804 = vrsqrt.f32 %v446_v6  ;;  %v327_v52 = vsub.f32 %v311_v44, %v1054_v56 }
 0x181   :  { %v440_v17 = vadd.f32 1e-06, %v328_v13  ;;  %v320_v18 = vmul.f32 0.03125, %v304_v14  ;;  %v319_v19 = vmul.f32 0.03125, %v303_v51  ;;  %v797_v20 = vpop.eup %796 }
 0x182   :  { %v274_v23 = vpop.xlane.xlu1 %273  ;;  %v272_v24 = vpop.xlane.xlu0 %271  ;;  %514 = vperm.xlu0 %790, %v795_v16   ;;  %469 = vperm.xlu1 %791, %v797_v20   ;;  %v439_v26 = vadd.f32 1e-06, %v327_v52 }
 0x183   :  { %806 = vrsqrt.f32 %v440_v17  ;;  %v336_v28 = vsub.f32 %v320_v18, %v1058_v57  ;;  %v298_v55 = vsub.f32 %v274_v23, %v1078_v63  ;;  %v335_v27 = vsub.f32 %v319_v19, %v1068_v60  ;;  %v799_v29 = vpop.eup %798 }
 0x184   :  { %808 = vrsqrt.f32 %v445_v15  ;;  %v297_v56 = vsub.f32 %v272_v24, %v1082_v0 }
 0x185   :  { %v448_v31 = vadd.f32 1e-06, %v336_v28  ;;  %v314_v33 = vmul.f32 0.03125, %v298_v55  ;;  %v447_v60 = vadd.f32 1e-06, %v335_v27 }
 0x186   :  { %v801_v37 = vpop.eup %800  ;;  %v313_v38 = vmul.f32 0.03125, %v297_v56  ;;  %v290_v40 = vpop.xlane.xlu1 %289  ;;  %484 = vperm.xlu0 %790, %v799_v29   ;;  %v1164_v29 = vld [vmem:[%s1265_s3] ss:$0 sm:$0xff]  ;;  %s881_s3 = smov [#allocation2]  }
 0x187   :  { %v288_v41 = vpop.xlane.xlu0 %287  ;;  %810 = vrsqrt.f32 %v448_v31  ;;  %v330_v57 = vsub.f32 %v314_v33, %v1078_v63  ;;  %v306_v35 = vsub.f32 %v290_v40, %v1088_v1  ;;  %509 = vperm.xlu1 %791, %v801_v37   ;;  %v1169_v37 = vld [vmem:[%s1266_s4] ss:$0 sm:$0xff]  ;;  %s710_s4 = sshll.u32 %s881_s3, 4  ;;  %s711_s4 = int_to_ptr.vmem [resolvable:$true] %s710_s4 }
 0x188   :  { %v305_v36 = vsub.f32 %v288_v41, %v1092_v2  ;;  %812 = vrsqrt.f32 %v439_v26  ;;  %v329_v45 = vsub.f32 %v313_v38, %v1082_v0  ;;  %s856_s29 = scalar_lea.vmem %s711_s4, 2048  ;;  %p861_p1 = scmp.lt.s32.totalorder %s711_s4, %s711_s4 }
 0x189   :  { %v803_v46 = vpop.eup %802  ;;  %v442_v49 = vadd.f32 1e-06, %v330_v57  ;;  %v322_v50 = vmul.f32 0.03125, %v306_v35  ;;  %p857_p0 = scmp.ne.s32.totalorder %s711_s4, %s856_s29  ;;  %p862_p2 = scmp.lt.s32.totalorder %s856_s29, %s856_s29 }
 0x18a   :  { %v321_v3 = vmul.f32 0.03125, %v305_v36  ;;  %v805_v4 = vpop.eup %804  ;;  %v441_v63 = vadd.f32 1e-06, %v329_v45  ;;  %v347_v13 = vpop.permute.xlu1 %346 }
 0x18b   :  { %814 = vrsqrt.f32 %v442_v49  ;;  %v338_v5 = vsub.f32 %v322_v50, %v1088_v1  ;;  %524 = vperm.xlu0 %790, %v805_v4   ;;  %479 = vperm.xlu1 %791, %v803_v46   ;;  %v420_v27 = vsub.f32 %v984_v21, %v347_v13  ;;  %p863_p3 = por %p862_p2, %p861_p1 }
 0x18c   :  { %816 = vrsqrt.f32 %v447_v60  ;;  %v337_v6 = vsub.f32 %v321_v3, %v1092_v2 }
 0x18d   :  { %v807_v7 = vpop.eup %806  ;;  %v450_v8 = vadd.f32 1e-06, %v338_v5  ;;  %p864_p4 = pnand %p863_p3, %p857_p0 }
 0x18e   :  { %v809_v9 = vpop.eup %808  ;;  %v449_v0 = vadd.f32 1e-06, %v337_v6  ;;  %v352_v14 = vpop.permute.xlu1 %351 }
 0x18f   :  { %818 = vrsqrt.f32 %v450_v8  ;;  %494 = vperm.xlu0 %790, %v807_v7   ;;  %519 = vperm.xlu1 %791, %v809_v9   ;;  %v342_v17 = vpop.permute.xlu0 %341  ;;  %v421_v7 = vsub.f32 %v1020_v42, %v352_v14 }
 0x190   :  { %820 = vrsqrt.f32 %v441_v63  ;;  %v419_v38 = vsub.f32 %v988_v25, %v342_v17 }
 0x191   :  { %v811_v39 = vpop.eup %810  ;;  %822 = vrsqrt.f32 %v449_v0 }
 0x192   :  { %v813_v10 = vpop.eup %812  ;;  %v357_v51 = vpop.permute.xlu1 %356 }
 0x193   :  { %534 = vperm.xlu0 %790, %v811_v39   ;;  %489 = vperm.xlu1 %791, %v813_v10   ;;  %v387_v19 = vpop.permute.xlu0 %386  ;;  %v422_v3 = vsub.f32 %v998_v30, %v357_v51 }
 0x194   :  { %v428_v40 = vsub.f32 %v986_v22, %v387_v19 }
 0x195   :  { %v815_v1 = vpop.eup %814 }
 0x196   :  { %v817_v44 = vpop.eup %816  ;;  %v1144_v15 = vpop.permute.xlu1 %361 }
 0x197   :  { %504 = vperm.xlu0 %790, %v815_v1   ;;  %529 = vperm.xlu1 %791, %v817_v44   ;;  %v397_v23 = vpop.permute.xlu0 %396 }
 0x199   :  { %v819_v11 = vpop.eup %818 }
 0x19a   :  { %v821_v12 = vpop.eup %820  ;;  %v1146_v52 = vpop.permute.xlu1 %366 }
 0x19b   :  { %544 = vperm.xlu0 %790, %v819_v11   ;;  %499 = vperm.xlu1 %791, %v821_v12   ;;  %v823_v2 = vpop.eup %822  ;;  %v1152_v28 = vpop.permute.xlu0 %406  ;;  %v424_v42 = vsub.f32 %v1030_v47, %v1146_v52  ;;  %v423_v47 = vsub.f32 %v1032_v48, %v1144_v15 }
 0x19e   :  { %v1148_v16 = vpop.permute.xlu1 %371 }
 0x19f   :  { %539 = vperm.xlu1 %791, %v823_v2   ;;  %v1156_v26 = vpop.permute.xlu0 %416 }
 0x1a2   :  { %v1150_v18 = vpop.permute.xlu1 %376 }
 0x1a6   :  { %v382_v20 = vpop.permute.xlu1 %381 }
 0x1a7   :  { %v427_v45 = vsub.f32 %v1004_v34, %v382_v20  ;;  %v430_v34 = vsub.f32 %v1002_v32, %v397_v23 }
 0x1aa   :  { %v392_v24 = vpop.permute.xlu1 %391 }
 0x1ab   :  { %v429_v32 = vsub.f32 %v1022_v43, %v392_v24  ;;  %v432_v43 = vsub.f32 %v1042_v53, %v1152_v28  ;;  %v425_v24 = vsub.f32 %v1064_v59, %v1148_v16  ;;  %v434_v53 = vsub.f32 %v1070_v61, %v1156_v26 }
 0x1ae   :  { %v1154_v55 = vpop.permute.xlu1 %401 }
 0x1b2   :  { %v1159_v56 = vpop.permute.xlu1 %411 }
 0x1fd   :  { %v475_v31 = vpop.permute.xlu0 %474 }
 0x1fe   :  { %v548_v33 = vmul.f32 %v475_v31, %v420_v27 }
 0x200   :  { %v571_v21 = vmul.f32 %v1164_v29, %v548_v33 }
 0x201   :  { %v470_v41 = vpop.permute.xlu1 %469  ;;  %v515_v57 = vpop.permute.xlu0 %514 }
 0x202   :  { %v594_v35 = vadd.f32 %v1169_v37, %v571_v21  ;;  %v547_v36 = vmul.f32 %v470_v41, %v419_v38  ;;  %v556_v60 = vmul.f32 %v515_v57, %v428_v40 }
 0x204   :  { %v626_v46 = vmul.f32 0.70710677, %v594_v35  ;;  %v570_v49 = vmul.f32 %v1164_v29, %v547_v36  ;;  %v579_v50 = vmul.f32 %v1164_v29, %v556_v60  ;;  %v610_v33 = vmul.f32 0.5, %v594_v35 }
 0x205   :  { %v485_v4 = vpop.permute.xlu0 %484 }
 0x206   :  { %v510_v25 = vpop.permute.xlu1 %509  ;;  %824 = verf.f32 %v626_v46  ;;  %v593_v22 = vadd.f32 %v1169_v37, %v570_v49  ;;  %v602_v5 = vadd.f32 %v1169_v37, %v579_v50  ;;  %v550_v6 = vmul.f32 %v485_v4, %v422_v3 }
 0x207   :  { %v555_v63 = vmul.f32 %v510_v25, %v427_v45  ;;  %v426_v45 = vsub.f32 %v1062_v58, %v1150_v18  ;;  %v431_v46 = vsub.f32 %v1046_v54, %v1154_v55 }
 0x208   :  { %v625_v8 = vmul.f32 0.70710677, %v593_v22  ;;  %v634_v9 = vmul.f32 0.70710677, %v602_v5  ;;  %v573_v39 = vmul.f32 %v1164_v29, %v550_v6  ;;  %v609_v50 = vmul.f32 0.5, %v593_v22 }
 0x209   :  { %v578_v0 = vmul.f32 %v1164_v29, %v555_v63  ;;  %v618_v25 = vmul.f32 0.5, %v602_v5 }
 0x20a   :  { %v480_v30 = vpop.permute.xlu1 %479  ;;  %v525_v10 = vpop.permute.xlu0 %524  ;;  %826 = verf.f32 %v625_v8  ;;  %v596_v12 = vadd.f32 %v1169_v37, %v573_v39 }
 0x20b   :  { %v549_v1 = vmul.f32 %v480_v30, %v421_v7  ;;  %v558_v44 = vmul.f32 %v525_v10, %v430_v34  ;;  %828 = verf.f32 %v634_v9  ;;  %v601_v11 = vadd.f32 %v1169_v37, %v578_v0 }
 0x20c   :  { %v628_v51 = vmul.f32 0.70710677, %v596_v12  ;;  %v612_v39 = vmul.f32 0.5, %v596_v12 }
 0x20d   :  { %v572_v2 = vmul.f32 %v1164_v29, %v549_v1  ;;  %v581_v13 = vmul.f32 %v1164_v29, %v558_v44  ;;  %v633_v14 = vmul.f32 0.70710677, %v601_v11  ;;  %v617_v9 = vmul.f32 0.5, %v601_v11 }
 0x20e   :  { %v520_v17 = vpop.permute.xlu1 %519  ;;  %v495_v19 = vpop.permute.xlu0 %494 }
 0x20f   :  { %v1193_v20 = vadd.f32 %v1169_v37, %v572_v2  ;;  %v1196_v23 = vadd.f32 %v1169_v37, %v581_v13  ;;  %v557_v27 = vmul.f32 %v520_v17, %v429_v32  ;;  %v552_v31 = vmul.f32 %v495_v19, %v424_v42 }
 0x210   :  { %830 = verf.f32 %v633_v14  ;;  %v825_v52 = vpop.eup %824  ;;  %v433_v19 = vsub.f32 %v1074_v62, %v1159_v56 }
 0x211   :  { %832 = verf.f32 %v628_v51  ;;  %v627_v38 = vmul.f32 0.70710677, %v1193_v20  ;;  %v658_v40 = vadd.f32 1.0, %v825_v52  ;;  %v636_v21 = vmul.f32 0.70710677, %v1196_v23 }
 0x212   :  { %v580_v41 = vmul.f32 %v1164_v29, %v557_v27  ;;  %v575_v57 = vmul.f32 %v1164_v29, %v552_v31  ;;  %v490_v48 = vpop.permute.xlu1 %489  ;;  %v535_v15 = vpop.permute.xlu0 %534 }
 0x213   :  { %834 = verf.f32 %v627_v38  ;;  %v551_v28 = vmul.f32 %v490_v48, %v423_v47  ;;  %v560_v36 = vmul.f32 %v535_v15, %v432_v43  ;;  %v674_v59 = vmul.f32 %v658_v40, %v610_v33 }
 0x214   :  { %836 = verf.f32 %v636_v21  ;;  %v1211_v16 = vadd.f32 %v1169_v37, %v580_v41  ;;  %v1214_v35 = vadd.f32 %v1169_v37, %v575_v57  ;;  %v827_v60 = vpop.eup %826  ;;  %v620_v21 = vmul.f32 0.5, %v1196_v23 }
 0x215   :  { %v574_v61 = vmul.f32 %v1164_v29, %v551_v28  ;;  %v583_v26 = vmul.f32 %v1164_v29, %v560_v36  ;;  %v829_v49 = vpop.eup %828  ;;  %690 = vst [vmem:[#allocation2 + $0x8] sm:$0xff] %v674_v59  ;;  %v657_v3 = vadd.f32 1.0, %v827_v60 }
 0x216   :  { %v635_v4 = vmul.f32 0.70710677, %v1211_v16  ;;  %v530_v63 = vpop.permute.xlu1 %529  ;;  %v505_v6 = vpop.permute.xlu0 %504  ;;  %v666_v7 = vadd.f32 1.0, %v829_v49  ;;  %v630_v34 = vmul.f32 0.70710677, %v1214_v35  ;;  %v619_v23 = vmul.f32 0.5, %v1211_v16 }
 0x217   :  { %v1225_v58 = vadd.f32 %v1169_v37, %v574_v61  ;;  %v1228_v54 = vadd.f32 %v1169_v37, %v583_v26  ;;  %v673_v18 = vmul.f32 %v657_v3, %v609_v50  ;;  %v559_v55 = vmul.f32 %v530_v63, %v431_v46 }
 0x218   :  { %838 = verf.f32 %v635_v4  ;;  %v554_v8 = vmul.f32 %v505_v6, %v426_v45  ;;  %v682_v22 = vmul.f32 %v666_v7, %v618_v25  ;;  %v614_v46 = vmul.f32 0.5, %v1214_v35 }
 0x219   :  { %840 = verf.f32 %v630_v34  ;;  %v629_v5 = vmul.f32 0.70710677, %v1225_v58  ;;  %689 = vst [vmem:[#allocation2] sm:$0xff] %v673_v18  ;;  %v638_v30 = vmul.f32 0.70710677, %v1228_v54  ;;  %v582_v10 = vmul.f32 %v1164_v29, %v559_v55 }
 0x21a   :  { %v831_v0 = vpop.eup %830  ;;  %v577_v1 = vmul.f32 %v1164_v29, %v554_v8  ;;  %v500_v44 = vpop.permute.xlu1 %499  ;;  %698 = vst [vmem:[#allocation2 + $0x48] sm:$0xff] %v682_v22  ;;  %v613_v4 = vmul.f32 0.5, %v1225_v58  ;;  %v622_v6 = vmul.f32 0.5, %v1228_v54 }
 0x21b   :  { %v545_v42 = vpop.permute.xlu0 %544  ;;  %v833_v32 = vpop.eup %832  ;;  %v665_v2 = vadd.f32 1.0, %v831_v0  ;;  %842 = verf.f32 %v629_v5  ;;  %v553_v13 = vmul.f32 %v500_v44, %v425_v24  ;;  %v605_v51 = vadd.f32 %v1169_v37, %v582_v10 }
 0x21c   :  { %v562_v11 = vmul.f32 %v545_v42, %v434_v53  ;;  %v660_v14 = vadd.f32 1.0, %v833_v32  ;;  %844 = verf.f32 %v638_v30  ;;  %v600_v12 = vadd.f32 %v1169_v37, %v577_v1 }
 0x21d   :  { %v835_v17 = vpop.eup %834  ;;  %v681_v27 = vmul.f32 %v665_v2, %v617_v9  ;;  %v576_v31 = vmul.f32 %v1164_v29, %v553_v13  ;;  %v611_v24 = vmul.f32 0.5, %v1193_v20  ;;  %v637_v38 = vmul.f32 0.70710677, %v605_v51 }
 0x21e   :  { %v585_v47 = vmul.f32 %v1164_v29, %v562_v11  ;;  %v837_v43 = vpop.eup %836  ;;  %v676_v52 = vmul.f32 %v660_v14, %v612_v39  ;;  %v659_v33 = vadd.f32 1.0, %v835_v17  ;;  %v540_v40 = vpop.permute.xlu1 %539  ;;  %v632_v57 = vmul.f32 0.70710677, %v600_v12 }
 0x21f   :  { %697 = vst [vmem:[#allocation2 + $0x40] sm:$0xff] %v681_v27  ;;  %v668_v41 = vadd.f32 1.0, %v837_v43  ;;  %v599_v48 = vadd.f32 %v1169_v37, %v576_v31  ;;  %846 = verf.f32 %v637_v38  ;;  %v561_v15 = vmul.f32 %v540_v40, %v433_v19 }
 0x220   :  { %692 = vst [vmem:[#allocation2 + $0x18] sm:$0xff] %v676_v52  ;;  %v675_v62 = vmul.f32 %v659_v33, %v611_v24  ;;  %v608_v56 = vadd.f32 %v1169_v37, %v585_v47  ;;  %848 = verf.f32 %v632_v57  ;;  %v616_v8 = vmul.f32 0.5, %v600_v12 }
 0x221   :  { %v684_v53 = vmul.f32 %v668_v41, %v620_v21  ;;  %v631_v28 = vmul.f32 0.70710677, %v599_v48  ;;  %v584_v59 = vmul.f32 %v1164_v29, %v561_v15  ;;  %v615_v39 = vmul.f32 0.5, %v599_v48 }
 0x222   :  { %v839_v20 = vpop.eup %838  ;;  %691 = vst [vmem:[#allocation2 + $0x10] sm:$0xff] %v675_v62  ;;  %v640_v36 = vmul.f32 0.70710677, %v608_v56  ;;  %v624_v54 = vmul.f32 0.5, %v608_v56 }
 0x223   :  { %v841_v60 = vpop.eup %840  ;;  %700 = vst [vmem:[#allocation2 + $0x58] sm:$0xff] %v684_v53  ;;  %v667_v45 = vadd.f32 1.0, %v839_v20  ;;  %850 = verf.f32 %v631_v28  ;;  %v607_v26 = vadd.f32 %v1169_v37, %v584_v59  ;;  %v621_v37 = vmul.f32 0.5, %v605_v51 }
 0x224   :  { %v662_v61 = vadd.f32 1.0, %v841_v60  ;;  %852 = verf.f32 %v640_v36 }
 0x225   :  { %v843_v49 = vpop.eup %842  ;;  %v683_v50 = vmul.f32 %v667_v45, %v619_v23  ;;  %v639_v29 = vmul.f32 0.70710677, %v607_v26  ;;  %v623_v32 = vmul.f32 0.5, %v607_v26 }
 0x226   :  { %v845_v3 = vpop.eup %844  ;;  %v678_v25 = vmul.f32 %v662_v61, %v614_v46  ;;  %v661_v63 = vadd.f32 1.0, %v843_v49 }
 0x227   :  { %699 = vst [vmem:[#allocation2 + $0x50] sm:$0xff] %v683_v50  ;;  %v670_v16 = vadd.f32 1.0, %v845_v3  ;;  %854 = verf.f32 %v639_v29 }
 0x228   :  { %694 = vst [vmem:[#allocation2 + $0x28] sm:$0xff] %v678_v25  ;;  %v677_v7 = vmul.f32 %v661_v63, %v613_v4 }
 0x229   :  { %v686_v35 = vmul.f32 %v670_v16, %v622_v6  ;;  %v847_v34 = vpop.eup %846 }
 0x22a   :  { %693 = vst [vmem:[#allocation2 + $0x20] sm:$0xff] %v677_v7  ;;  %v849_v18 = vpop.eup %848  ;;  %v669_v55 = vadd.f32 1.0, %v847_v34 }
 0x22b   :  { %702 = vst [vmem:[#allocation2 + $0x68] sm:$0xff] %v686_v35  ;;  %v664_v22 = vadd.f32 1.0, %v849_v18 }
 0x22c   :  { %v685_v58 = vmul.f32 %v669_v55, %v621_v37 }
 0x22d   :  { %v851_v9 = vpop.eup %850  ;;  %v680_v0 = vmul.f32 %v664_v22, %v616_v8 }
 0x22e   :  { %v853_v5 = vpop.eup %852  ;;  %v663_v30 = vadd.f32 1.0, %v851_v9  ;;  %701 = vst [vmem:[#allocation2 + $0x60] sm:$0xff] %v685_v58 }
 0x22f   :  { %v672_v10 = vadd.f32 1.0, %v853_v5  ;;  %696 = vst [vmem:[#allocation2 + $0x38] sm:$0xff] %v680_v0 }
 0x230   :  { %v679_v1 = vmul.f32 %v663_v30, %v615_v39 }
 0x231   :  { %v688_v44 = vmul.f32 %v672_v10, %v624_v54  ;;  %v855_v42 = vpop.eup %854 }
 0x232   :  { %695 = vst [vmem:[#allocation2 + $0x30] sm:$0xff] %v679_v1  ;;  %v671_v2 = vadd.f32 1.0, %v855_v42 }
 0x233   :  { %704 = vst [vmem:[#allocation2 + $0x78] sm:$0xff] %v688_v44 }
 0x234   :  { %v687_v13 = vmul.f32 %v671_v2, %v623_v32 }
 0x236   :  { %703 = vst [vmem:[#allocation2 + $0x70] sm:$0xff] %v687_v13 }
 0x237   :  { %867 = shalt.err (!%p864_p4)
}
 0x238   :  { %s868_s7 = scalar_lea.hbm %s1267_s5, 2048 }
 0x239   :  { %p869_p5 = scmp.ne.s32.totalorder %s1267_s5, %s868_s7  ;;  %p872_p6 = scmp.lt.u32.totalorder %s868_s7, %s1267_s5 }
 0x23b   :  { %p874_p7 = pnand %p872_p6, %p869_p5 }
 0x23d   :  { %877 = shalt.err (!%p874_p7)
}
 0x23e   :  { %s882_s12 = smov 128   ;;  %s883_s13 = smov 8  }
 0x23f   :  { %716 = dma.vmem_to_hbm [thread:$0]  %s711_s4, 2048, %s1267_s5, [#allocation3], %s882_s12, %s882_s12, %s883_s13  }
 0x240   :  { %878 = dma.done.wait [#allocation3], 2048  }
 0x241   :  { %879 = vsyncadd [#allocation3], 4294965248 }
 0x242   :  { %720 = vsyncpa [#allocation3], 1 }

</bundles_post_ra>
